<compile_context>
chip_gen: v7x
topology: tpu7x:2x2x1
jax: 0.10.0
libtpu: 0.0.40
codegen_flags: <defaults>
</compile_context>

<pallas_src>
import functools

import jax
import jax.numpy as jnp
from jax.experimental import pallas as pl
from jax.experimental.pallas import tpu as pltpu


def _round_up(n, m):
    return ((n + m - 1) // m) * m


def _linear_down_up_kernel(x_ref, ws_ref, bs_ref, wo_ref, bo_ref, o_ref, *,
                           num_layers, mxu_dtype):
    # x_ref: (rows_tile, G*F)  batch-major, packed features lane-dense (GF ~ 256).
    h = x_ref[...].astype(jnp.float32)
    for l in range(num_layers):                       # static unroll
        w = ws_ref[l]                                 # (GF, GF) block-diag, mxu_dtype (latched KxN)
        b = bs_ref[l:l + 1, :]                        # (1, GF) f32, broadcast over rows
        acc = jnp.dot(h.astype(mxu_dtype), w, preferred_element_type=jnp.float32)
        h = jnp.tanh(acc + b)                         # bias/tanh in f32 (portable to v5e)
    logits = jnp.dot(h.astype(mxu_dtype), wo_ref[...],
                     preferred_element_type=jnp.float32) + bo_ref[...]
    o_ref[...] = logits.astype(o_ref.dtype)           # (rows_tile, G*out)


def linear_down_up_block(x, params, *, rows_tile=512, pack_lanes=256,
                         mxu_dtype=jnp.bfloat16):
    """LinearDownUpBlock forward (reduce=False) as one Pallas call.

    x: (B, F).  params: dict(ws=(L,F,F), bs=(L,F), wo=(out,F), bo=(out,)) with
    PyTorch (out, in) weight layout.
    """
    B, F = x.shape
    ws, bs, wo, bo = params["ws"], params["bs"], params["wo"], params["bo"]
    L = ws.shape[0]
    out_f = wo.shape[0]

    # ---- Block-diagonal batch packing: G batch elements share one packed row.
    G = max(1, pack_lanes // F)          # G*F ~ 256 -> fills v6e/v7x MXU, 2 passes on v5e
    GF = G * F
    GO = G * out_f

    # ---- Batch tiling: clamp tile to the real batch; keep >=2 grid steps when
    #      there is enough work so both v7x TensorCores are used.
    rows_needed = -(-B // G)                               # packed rows needed
    rt = min(rows_tile, _round_up(rows_needed, 8))
    if rows_needed > 16 and -(-rows_needed // rt) < 2:
        rt = max(8, _round_up(-(-rows_needed // 2), 8))
    steps = -(-rows_needed // rt)
    R = steps * rt                                          # padded packed rows
    Bp = R * G                                              # padded batch

    # ---- x relayout: pure pad + reshape (NO HBM transpose).  Packed row r holds
    #      batch elements r*G .. r*G + G - 1.
    x_packed = jnp.pad(x, ((0, Bp - B), (0, 0))).reshape(R, GF)

    # ---- One-time block-diagonal weights, (in, out) oriented so the kernel does
    #      h @ W_bd (weight is the latched K x N operand), in MXU dtype.
    eye_g = jnp.eye(G, dtype=ws.dtype)
    ws_bd = jnp.einsum("gh,loi->lgiho", eye_g, ws).reshape(L, GF, GF).astype(mxu_dtype)
    wo_bd = jnp.einsum("gh,oi->giho", eye_g, wo).reshape(GF, GO).astype(mxu_dtype)
    bs_rep = jnp.tile(bs, (1, G)).astype(jnp.float32)            # (L, GF)
    bo_rep = jnp.tile(bo, G).reshape(1, GO).astype(jnp.float32)  # (1, GO)

    cost = pl.CostEstimate(
        flops=2 * R * GF * (L * GF + GO),
        transcendentals=L * R * GF,
        bytes_accessed=(x_packed.size * x_packed.dtype.itemsize
                        + R * GO * x.dtype.itemsize
                        + ws_bd.size * ws_bd.dtype.itemsize
                        + wo_bd.size * wo_bd.dtype.itemsize
                        + (bs_rep.size + bo_rep.size) * 4),
    )

    def resident(arr):  # full block, constant index_map -> stays in VMEM across steps
        nd = arr.ndim
        return pl.BlockSpec(arr.shape, lambda i, _nd=nd: (0,) * _nd)

    out_packed = pl.pallas_call(
        functools.partial(_linear_down_up_kernel, num_layers=L, mxu_dtype=mxu_dtype),
        out_shape=jax.ShapeDtypeStruct((R, GO), x.dtype),
        grid_spec=pltpu.PrefetchScalarGridSpec(
            num_scalar_prefetch=0,
            grid=(steps,),
            in_specs=[
                pl.BlockSpec((rt, GF), lambda i: (i, 0)),
                resident(ws_bd), resident(bs_rep),
                resident(wo_bd), resident(bo_rep),
            ],
            out_specs=pl.BlockSpec((rt, GO), lambda i: (i, 0)),
        ),
        compiler_params=pltpu.CompilerParams(
            dimension_semantics=("parallel",)),
        cost_estimate=cost,
    )(x_packed, ws_bd, bs_rep, wo_bd, bo_rep)

    # Un-pack: (R, G*out) -> (Bp, out) is a pure reshape; slice off batch padding.
    return out_packed.reshape(Bp, out_f)[:B]


def init_params(key, in_features, out_features, *, num_layers=3,
                dtype=jnp.float32):
    """nn.Linear-style init (U(+/- 1/sqrt(fan_in))), PyTorch (out, in) weight layout."""
    ks = jax.random.split(key, 2 * num_layers + 2)
    bound = 1.0 / (in_features ** 0.5)
    ws = jnp.stack([
        jax.random.uniform(ks[2 * i], (in_features, in_features), dtype, -bound, bound)
        for i in range(num_layers)])
    bs = jnp.stack([
        jax.random.uniform(ks[2 * i + 1], (in_features,), dtype, -bound, bound)
        for i in range(num_layers)])
    wo = jax.random.uniform(ks[-2], (out_features, in_features), dtype, -bound, bound)
    bo = jax.random.uniform(ks[-1], (out_features,), dtype, -bound, bound)
    return dict(ws=ws, bs=bs, wo=wo, bo=bo)


def reference(x, p):
    h = x
    for l in range(p["ws"].shape[0]):
        h = jnp.tanh(h @ p["ws"][l].T + p["bs"][l])
    return h @ p["wo"].T + p["bo"]


if __name__ == "__main__":
    key = jax.random.PRNGKey(0)
    kx, kp = jax.random.split(key)

    B, in_features, out_features = 16, 32, 1
    x = jax.random.normal(kx, (B, in_features), jnp.float32)
    params = init_params(kp, in_features, out_features, num_layers=3)
    ref = reference(x, params)

    # f32-MXU path: matches the f32 reference tightly.
    out_f32 = jax.block_until_ready(
        linear_down_up_block(x, params, mxu_dtype=jnp.float32))
    assert out_f32.shape == (B, out_features)
    assert jnp.allclose(out_f32, ref, atol=1e-4, rtol=1e-4), "f32 path mismatch"

    # bf16-MXU fast path (default; f32 accumulate): small quantization drift expected.
    out_bf16 = jax.block_until_ready(
        linear_down_up_block(x, params, mxu_dtype=jnp.bfloat16))
    assert out_bf16.shape == (B, out_features)
    assert jnp.allclose(out_bf16, ref, atol=5e-2, rtol=5e-2), "bf16 path mismatch"

    print("KERNEL_OK")
</pallas_src>

<mosaic_0001>
module attributes {stable_mosaic.version = 11 : i64} {
  func.func @_linear_down_up_kernel(%arg0: i32, %arg1: memref<8x256xf32, #tpu.memory_space<vmem>>, %arg2: memref<3x256x256xf32, #tpu.memory_space<vmem>>, %arg3: memref<3x256xf32, #tpu.memory_space<vmem>>, %arg4: memref<256x8xf32, #tpu.memory_space<vmem>>, %arg5: memref<1x8xf32, #tpu.memory_space<vmem>>, %arg6: memref<8x8xf32, #tpu.memory_space<vmem>>) attributes {dimension_semantics = [#tpu.dimension_semantics<parallel>], iteration_bounds = array<i64: 1>, scalar_prefetch = 0 : i64, scratch_operands = 0 : i64, tpu.core_type = #tpu.core_type<tc>, window_params = [{transform_indices = @transform_0, window_bounds = array<i64: 8, 256>}, {pipeline_mode = #tpu.pipeline_mode<synchronous>, transform_indices = @transform_1, window_bounds = array<i64: 3, 256, 256>}, {pipeline_mode = #tpu.pipeline_mode<synchronous>, transform_indices = @transform_2, window_bounds = array<i64: 3, 256>}, {pipeline_mode = #tpu.pipeline_mode<synchronous>, transform_indices = @transform_3, window_bounds = array<i64: 256, 8>}, {pipeline_mode = #tpu.pipeline_mode<synchronous>, transform_indices = @transform_4, window_bounds = array<i64: 1, 8>}, {transform_indices = @transform_5, window_bounds = array<i64: 8, 8>}]} {
    %c0 = arith.constant 0 : index
    %c0_0 = arith.constant 0 : index
    %0 = vector.load %arg1[%c0, %c0_0] : memref<8x256xf32, #tpu.memory_space<vmem>>, vector<8x256xf32>
    %c0_1 = arith.constant 0 : index
    %c0_2 = arith.constant 0 : index
    %c0_3 = arith.constant 0 : index
    %1 = vector.load %arg2[%c0_1, %c0_2, %c0_3] : memref<3x256x256xf32, #tpu.memory_space<vmem>>, vector<1x256x256xf32>
    %2 = vector.shape_cast %1 : vector<1x256x256xf32> to vector<256x256xf32>
    %c0_4 = arith.constant 0 : index
    %c0_5 = arith.constant 0 : index
    %3 = vector.load %arg3[%c0_4, %c0_5] : memref<3x256xf32, #tpu.memory_space<vmem>>, vector<1x256xf32>
    %cst = arith.constant dense<0.000000e+00> : vector<8x256xf32>
    %4 = tpu.matmul %0, %2, %cst {dimension_numbers = #tpu.dot_dimension_numbers<[1], [0], [0], [1], [0, 0, 1, 1], [], []>} : vector<8x256xf32>, vector<256x256xf32>, vector<8x256xf32> -> vector<8x256xf32>
    %5 = vector.broadcast %3 : vector<1x256xf32> to vector<8x256xf32>
    %6 = arith.addf %4, %5 : vector<8x256xf32>
    %7 = math.tanh %6 : vector<8x256xf32>
    %c1 = arith.constant 1 : index
    %c0_6 = arith.constant 0 : index
    %c0_7 = arith.constant 0 : index
    %8 = vector.load %arg2[%c1, %c0_6, %c0_7] : memref<3x256x256xf32, #tpu.memory_space<vmem>>, vector<1x256x256xf32>
    %9 = vector.shape_cast %8 : vector<1x256x256xf32> to vector<256x256xf32>
    %c1_8 = arith.constant 1 : index
    %c0_9 = arith.constant 0 : index
    %10 = vector.load %arg3[%c1_8, %c0_9] : memref<3x256xf32, #tpu.memory_space<vmem>>, vector<1x256xf32>
    %cst_10 = arith.constant dense<0.000000e+00> : vector<8x256xf32>
    %11 = tpu.matmul %7, %9, %cst_10 {dimension_numbers = #tpu.dot_dimension_numbers<[1], [0], [0], [1], [0, 0, 1, 1], [], []>} : vector<8x256xf32>, vector<256x256xf32>, vector<8x256xf32> -> vector<8x256xf32>
    %12 = vector.broadcast %10 : vector<1x256xf32> to vector<8x256xf32>
    %13 = arith.addf %11, %12 : vector<8x256xf32>
    %14 = math.tanh %13 : vector<8x256xf32>
    %c2 = arith.constant 2 : index
    %c0_11 = arith.constant 0 : index
    %c0_12 = arith.constant 0 : index
    %15 = vector.load %arg2[%c2, %c0_11, %c0_12] : memref<3x256x256xf32, #tpu.memory_space<vmem>>, vector<1x256x256xf32>
    %16 = vector.shape_cast %15 : vector<1x256x256xf32> to vector<256x256xf32>
    %c2_13 = arith.constant 2 : index
    %c0_14 = arith.constant 0 : index
    %17 = vector.load %arg3[%c2_13, %c0_14] : memref<3x256xf32, #tpu.memory_space<vmem>>, vector<1x256xf32>
    %cst_15 = arith.constant dense<0.000000e+00> : vector<8x256xf32>
    %18 = tpu.matmul %14, %16, %cst_15 {dimension_numbers = #tpu.dot_dimension_numbers<[1], [0], [0], [1], [0, 0, 1, 1], [], []>} : vector<8x256xf32>, vector<256x256xf32>, vector<8x256xf32> -> vector<8x256xf32>
    %19 = vector.broadcast %17 : vector<1x256xf32> to vector<8x256xf32>
    %20 = arith.addf %18, %19 : vector<8x256xf32>
    %21 = math.tanh %20 : vector<8x256xf32>
    %c0_16 = arith.constant 0 : index
    %c0_17 = arith.constant 0 : index
    %22 = vector.load %arg4[%c0_16, %c0_17] : memref<256x8xf32, #tpu.memory_space<vmem>>, vector<256x8xf32>
    %cst_18 = arith.constant dense<0.000000e+00> : vector<8x8xf32>
    %23 = tpu.matmul %21, %22, %cst_18 {dimension_numbers = #tpu.dot_dimension_numbers<[1], [0], [0], [1], [0, 0, 1, 1], [], []>} : vector<8x256xf32>, vector<256x8xf32>, vector<8x8xf32> -> vector<8x8xf32>
    %c0_19 = arith.constant 0 : index
    %c0_20 = arith.constant 0 : index
    %24 = vector.load %arg5[%c0_19, %c0_20] : memref<1x8xf32, #tpu.memory_space<vmem>>, vector<1x8xf32>
    %25 = vector.broadcast %24 : vector<1x8xf32> to vector<8x8xf32>
    %26 = arith.addf %23, %25 : vector<8x8xf32>
    %c0_21 = arith.constant 0 : index
    %c0_22 = arith.constant 0 : index
    %27 = vector.load %arg6[%c0_21, %c0_22] : memref<8x8xf32, #tpu.memory_space<vmem>>, vector<8x8xf32>
    tpu.vector_store %arg6[%c0_21, %c0_22], %26 {strides = array<i32>} : memref<8x8xf32, #tpu.memory_space<vmem>>, vector<8x8xf32>,
    return
  }
  func.func @transform_0(%arg0: i32) -> (i32, i32) {
    %c0_i32 = arith.constant 0 : i32
    %c0_i32_0 = arith.constant 0 : i32
    return %arg0, %c0_i32 : i32, i32
  }
  func.func @transform_1(%arg0: i32) -> (i32, i32, i32) {
    %c0_i32 = arith.constant 0 : i32
    %c0_i32_0 = arith.constant 0 : i32
    %c0_i32_1 = arith.constant 0 : i32
    %c0_i32_2 = arith.constant 0 : i32
    return %c0_i32, %c0_i32_0, %c0_i32_1 : i32, i32, i32
  }
  func.func @transform_2(%arg0: i32) -> (i32, i32) {
    %c0_i32 = arith.constant 0 : i32
    %c0_i32_0 = arith.constant 0 : i32
    %c0_i32_1 = arith.constant 0 : i32
    return %c0_i32, %c0_i32_0 : i32, i32
  }
  func.func @transform_3(%arg0: i32) -> (i32, i32) {
    %c0_i32 = arith.constant 0 : i32
    %c0_i32_0 = arith.constant 0 : i32
    %c0_i32_1 = arith.constant 0 : i32
    return %c0_i32, %c0_i32_0 : i32, i32
  }
  func.func @transform_4(%arg0: i32) -> (i32, i32) {
    %c0_i32 = arith.constant 0 : i32
    %c0_i32_0 = arith.constant 0 : i32
    %c0_i32_1 = arith.constant 0 : i32
    return %c0_i32, %c0_i32_0 : i32, i32
  }
  func.func @transform_5(%arg0: i32) -> (i32, i32) {
    %c0_i32 = arith.constant 0 : i32
    %c0_i32_0 = arith.constant 0 : i32
    return %arg0, %c0_i32 : i32, i32
  }
}

</mosaic_0001>

<bundles_post_ra>
// kernel: tpu_custom_call.1
= control target key start
LH: loop header
LB: loop body
LE: loop exit
PB: predicated region body
PF: predicated region fallthrough
CT: control target
= control target key end

     0   :  { %10 = vsyncpa [#allocation3], 0  ;;  %s1122_s0 = inlined_call_operand.vmem [shape: f32[8,256], index: 0, kind: input, shape index: {}]   ;;  %s1123_s1 = inlined_call_operand.hbm [shape: f32[3,256,256], index: 1, kind: input, shape index: {}]   ;;  %s1124_s2 = inlined_call_operand.vmem [shape: f32[3,256], index: 2, kind: input, shape index: {}]   ;;  %s1125_s3 = inlined_call_operand.vmem [shape: f32[256,8], index: 3, kind: input, shape index: {}]   ;;  %s1126_s4 = inlined_call_operand.vmem [shape: f32[1,8], index: 4, kind: input, shape index: {}]   ;;  %s1127_s5 = inlined_call_operand.hbm [shape: f32[8,8], index: 5, kind: output, shape index: {}]  }
   0x1   :  { %11 = vsyncpa [#allocation4], 0  ;;  %s940_s18 = smov [#allocation2]   ;;  %s892_s22 = scalar_lea.hbm %s1123_s1, 24576 }
   0x2   :  { %s19_s19 = sshll.u32 %s940_s18, 4  ;;  %p893_p0 = scmp.ne.s32.totalorder %s1123_s1, %s892_s22  ;;  %s20_s19 = int_to_ptr.vmem [resolvable:$true] %s19_s19 }
   0x3   :  { %p896_p1 = scmp.lt.u32.totalorder %s892_s22, %s1123_s1 }
   0x5   :  { %p898_p2 = pnand %p896_p1, %p893_p0 }
   0x7   :  { %901 = shalt.err (!%p898_p2)
}
   0x8   :  { %s902_s27 = scalar_lea.vmem %s20_s19, 24576  ;;  %p907_p4 = scmp.lt.s32.totalorder %s20_s19, %s20_s19 }
   0x9   :  { %p903_p3 = scmp.ne.s32.totalorder %s20_s19, %s902_s27  ;;  %p908_p5 = scmp.lt.s32.totalorder %s902_s27, %s902_s27 }
   0xb   :  { %p909_p6 = por %p908_p5, %p907_p4 }
   0xd   :  { %p910_p7 = pnand %p909_p6, %p903_p3 }
   0xf   :  { %913 = shalt.err (!%p910_p7)
}
  0x10   :  { %s941_s28 = smov 256   ;;  %s942_s29 = smov 16  }
  0x11   :  { %25 = dma.hbm_to_vmem [thread:$0]  %s1123_s1, 24576, %s20_s19, [#allocation3], %s941_s28, %s941_s28, %s942_s29  }
  0x12   :  { %936 = dma.done.wait [#allocation3], 24576  }
  0x13   :  { %937 = vsyncadd [#allocation3], 4294942720  ;;  %v38_v0 = vld [vmem:[#allocation2 + $0x8] sm:$0xff]  ;;  %v40_v1 = vld [vmem:[#allocation2 + $0x18] sm:$0xff]  ;;  %vm597_vm0 = vcmask 64512  }
  0x14   :  { %v37_v2 = vld [vmem:[#allocation2] sm:$0xff]  ;;  %v652_v3 = vpack.c.bf16 %v40_v1, %v38_v0  ;;  %v39_v4 = vld [vmem:[#allocation2 + $0x10] sm:$0xff]  ;;  %v42_v5 = vld [vmem:[#allocation2 + $0x28] sm:$0xff] }
  0x15   :  { %v44_v6 = vld [vmem:[#allocation2 + $0x38] sm:$0xff]  ;;  %v654_v7 = vpack.c.bf16 %v39_v4, %v37_v2  ;;  %v41_v9 = vld [vmem:[#allocation2 + $0x20] sm:$0xff]  ;;  %v43_v10 = vld [vmem:[#allocation2 + $0x30] sm:$0xff] }
  0x16   :  { %v656_v8 = vpack.c.bf16 %v44_v6, %v42_v5  ;;  %v46_v11 = vld [vmem:[#allocation2 + $0x48] sm:$0xff]  ;;  %653 = vmatprep.subr.bf16.mxu0 %v652_v3  ;;  %v48_v12 = vld [vmem:[#allocation2 + $0x58] sm:$0xff]  ;;  %v658_v13 = vpack.c.bf16 %v43_v10, %v41_v9  ;;  %v45_v15 = vld [vmem:[#allocation2 + $0x40] sm:$0xff] }
  0x17   :  { %655 = vmatpush1.bf16.msra.mxu0 %v654_v7  ;;  %v660_v14 = vpack.c.bf16 %v48_v12, %v46_v11  ;;  %v47_v16 = vld [vmem:[#allocation2 + $0x50] sm:$0xff]  ;;  %v50_v17 = vld [vmem:[#allocation2 + $0x68] sm:$0xff]  ;;  %v52_v18 = vld [vmem:[#allocation2 + $0x78] sm:$0xff] }
  0x18   :  { %657 = vmatprep.subr.bf16.mxu0 %v656_v8  ;;  %v662_v19 = vpack.c.bf16 %v47_v16, %v45_v15  ;;  %v664_v20 = vpack.c.bf16 %v52_v18, %v50_v17  ;;  %v49_v21 = vld [vmem:[#allocation2 + $0x60] sm:$0xff]  ;;  %v51_v22 = vld [vmem:[#allocation2 + $0x70] sm:$0xff]  ;;  %v54_v23 = vld [vmem:[#allocation2 + $0x88] sm:$0xff] }
  0x19   :  { %v56_v24 = vld [vmem:[#allocation2 + $0x98] sm:$0xff]  ;;  %v666_v25 = vpack.c.bf16 %v51_v22, %v49_v21  ;;  %v53_v27 = vld [vmem:[#allocation2 + $0x80] sm:$0xff]  ;;  %v55_v28 = vld [vmem:[#allocation2 + $0x90] sm:$0xff] }
  0x1a   :  { %v668_v26 = vpack.c.bf16 %v56_v24, %v54_v23  ;;  %v58_v29 = vld [vmem:[#allocation2 + $0xa8] sm:$0xff]  ;;  %v60_v30 = vld [vmem:[#allocation2 + $0xb8] sm:$0xff]  ;;  %v670_v31 = vpack.c.bf16 %v55_v28, %v53_v27  ;;  %v57_v33 = vld [vmem:[#allocation2 + $0xa0] sm:$0xff] }
  0x1b   :  { %659 = vmatpush1.bf16.msra.mxu0 %v658_v13  ;;  %v672_v32 = vpack.c.bf16 %v60_v30, %v58_v29  ;;  %v59_v34 = vld [vmem:[#allocation2 + $0xb0] sm:$0xff]  ;;  %v62_v35 = vld [vmem:[#allocation2 + $0xc8] sm:$0xff]  ;;  %v64_v36 = vld [vmem:[#allocation2 + $0xd8] sm:$0xff] }
  0x1c   :  { %661 = vmatprep.subr.bf16.mxu0 %v660_v14  ;;  %v674_v37 = vpack.c.bf16 %v59_v34, %v57_v33  ;;  %v61_v38 = vld [vmem:[#allocation2 + $0xc0] sm:$0xff]  ;;  %v63_v39 = vld [vmem:[#allocation2 + $0xd0] sm:$0xff]  ;;  %v676_v40 = vpack.c.bf16 %v64_v36, %v62_v35  ;;  %v66_v41 = vld [vmem:[#allocation2 + $0xe8] sm:$0xff] }
  0x1d   :  { %v68_v42 = vld [vmem:[#allocation2 + $0xf8] sm:$0xff]  ;;  %v36_v43 = vld [vmem:[%s1122_s0 + $0x8] sm:$0xff]  ;;  %v187_v46 = vld [vmem:[#allocation2 + $0x200] sm:$0xff]  ;;  %v678_v51 = vpack.c.bf16 %v63_v39, %v61_v38 }
  0x1e   :  { %177 = vmatprep.mubr.f32.mxu0 %v36_v43  ;;  %v188_v44 = vld [vmem:[#allocation2 + $0x208] sm:$0xff]  ;;  %v190_v45 = vld [vmem:[#allocation2 + $0x218] sm:$0xff]  ;;  %v189_v48 = vld [vmem:[#allocation2 + $0x210] sm:$0xff]  ;;  %v680_v57 = vpack.c.bf16 %v68_v42, %v66_v41 }
  0x1f   :  { %663 = vmatpush1.bf16.msra.mxu0 %v662_v19  ;;  %v716_v47 = vpack.c.bf16 %v190_v45, %v188_v44  ;;  %v192_v49 = vld [vmem:[#allocation2 + $0x228] sm:$0xff]  ;;  %v194_v50 = vld [vmem:[#allocation2 + $0x238] sm:$0xff]  ;;  %v718_v52 = vpack.c.bf16 %v189_v48, %v187_v46  ;;  %v191_v54 = vld [vmem:[#allocation2 + $0x220] sm:$0xff] }
  0x20   :  { %665 = vmatprep.subr.bf16.mxu0 %v664_v20  ;;  %v720_v53 = vpack.c.bf16 %v194_v50, %v192_v49  ;;  %v193_v55 = vld [vmem:[#allocation2 + $0x230] sm:$0xff]  ;;  %v196_v56 = vld [vmem:[#allocation2 + $0x248] sm:$0xff]  ;;  %v65_v58 = vld [vmem:[#allocation2 + $0xe0] sm:$0xff] }
  0x21   :  { %v67_v59 = vld [vmem:[#allocation2 + $0xf0] sm:$0xff]  ;;  %717 = vmatprep.subr.bf16.mxu1 %v716_v47  ;;  %v198_v60 = vld [vmem:[#allocation2 + $0x258] sm:$0xff]  ;;  %v70_v61 = vld [vmem:[#allocation2 + $0x108] sm:$0xff]  ;;  %v722_v63 = vpack.c.bf16 %v193_v55, %v191_v54 }
  0x22   :  { %v72_v62 = vld [vmem:[#allocation2 + $0x118] sm:$0xff]  ;;  %719 = vmatpush1.bf16.msra.mxu1 %v718_v52  ;;  %v724_v0 = vpack.c.bf16 %v198_v60, %v196_v56  ;;  %v195_v1 = vld [vmem:[#allocation2 + $0x240] sm:$0xff]  ;;  %v197_v2 = vld [vmem:[#allocation2 + $0x250] sm:$0xff]  ;;  %v682_v3 = vpack.c.bf16 %v67_v59, %v65_v58 }
  0x23   :  { %667 = vmatpush1.bf16.msra.mxu0 %v666_v25  ;;  %721 = vmatprep.subr.bf16.mxu1 %v720_v53  ;;  %v200_v4 = vld [vmem:[#allocation2 + $0x268] sm:$0xff]  ;;  %v202_v5 = vld [vmem:[#allocation2 + $0x278] sm:$0xff]  ;;  %v684_v6 = vpack.c.bf16 %v72_v62, %v70_v61  ;;  %v69_v7 = vld [vmem:[#allocation2 + $0x100] sm:$0xff]  ;;  %v726_v11 = vpack.c.bf16 %v197_v2, %v195_v1 }
  0x24   :  { %669 = vmatprep.subr.bf16.mxu0 %v668_v26  ;;  %v71_v8 = vld [vmem:[#allocation2 + $0x110] sm:$0xff]  ;;  %v74_v9 = vld [vmem:[#allocation2 + $0x128] sm:$0xff]  ;;  %v76_v10 = vld [vmem:[#allocation2 + $0x138] sm:$0xff]  ;;  %v728_v12 = vpack.c.bf16 %v202_v5, %v200_v4 }
  0x25   :  { %v199_v13 = vld [vmem:[#allocation2 + $0x260] sm:$0xff]  ;;  %v201_v14 = vld [vmem:[#allocation2 + $0x270] sm:$0xff]  ;;  %v686_v15 = vpack.c.bf16 %v71_v8, %v69_v7  ;;  %v204_v16 = vld [vmem:[#allocation2 + $0x288] sm:$0xff]  ;;  %v688_v18 = vpack.c.bf16 %v76_v10, %v74_v9 }
  0x26   :  { %723 = vmatpush1.bf16.msra.mxu1 %v722_v63  ;;  %v206_v17 = vld [vmem:[#allocation2 + $0x298] sm:$0xff]  ;;  %v73_v19 = vld [vmem:[#allocation2 + $0x120] sm:$0xff]  ;;  %v75_v20 = vld [vmem:[#allocation2 + $0x130] sm:$0xff]  ;;  %v730_v23 = vpack.c.bf16 %v201_v14, %v199_v13 }
  0x27   :  { %671 = vmatpush1.bf16.msra.mxu0 %v670_v31  ;;  %725 = vmatprep.subr.bf16.mxu1 %v724_v0  ;;  %v78_v21 = vld [vmem:[#allocation2 + $0x148] sm:$0xff]  ;;  %v80_v22 = vld [vmem:[#allocation2 + $0x158] sm:$0xff]  ;;  %v732_v24 = vpack.c.bf16 %v206_v17, %v204_v16  ;;  %v203_v25 = vld [vmem:[#allocation2 + $0x280] sm:$0xff]  ;;  %v690_v27 = vpack.c.bf16 %v75_v20, %v73_v19 }
  0x28   :  { %673 = vmatprep.subr.bf16.mxu0 %v672_v32  ;;  %v205_v26 = vld [vmem:[#allocation2 + $0x290] sm:$0xff]  ;;  %v208_v28 = vld [vmem:[#allocation2 + $0x2a8] sm:$0xff]  ;;  %v210_v29 = vld [vmem:[#allocation2 + $0x2b8] sm:$0xff]  ;;  %v692_v30 = vpack.c.bf16 %v80_v22, %v78_v21 }
  0x29   :  { %v77_v31 = vld [vmem:[#allocation2 + $0x140] sm:$0xff]  ;;  %v79_v32 = vld [vmem:[#allocation2 + $0x150] sm:$0xff]  ;;  %v82_v33 = vld [vmem:[#allocation2 + $0x168] sm:$0xff]  ;;  %v734_v35 = vpack.c.bf16 %v205_v26, %v203_v25  ;;  %v736_v36 = vpack.c.bf16 %v210_v29, %v208_v28 }
  0x2a   :  { %727 = vmatpush1.bf16.msra.mxu1 %v726_v11  ;;  %v84_v34 = vld [vmem:[#allocation2 + $0x178] sm:$0xff]  ;;  %v209_v38 = vld [vmem:[#allocation2 + $0x2b0] sm:$0xff]  ;;  %v694_v39 = vpack.c.bf16 %v79_v32, %v77_v31  ;;  %v81_v43 = vld [vmem:[#allocation2 + $0x160] sm:$0xff] }
  0x2b   :  { %675 = vmatpush1.bf16.msra.mxu0 %v674_v37  ;;  %729 = vmatprep.subr.bf16.mxu1 %v728_v12  ;;  %v207_v37 = vld [vmem:[#allocation2 + $0x2a0] sm:$0xff]  ;;  %v214_v41 = vld [vmem:[#allocation2 + $0x2d8] sm:$0xff]  ;;  %v696_v42 = vpack.c.bf16 %v84_v34, %v82_v33  ;;  %v83_v44 = vld [vmem:[#allocation2 + $0x170] sm:$0xff] }
  0x2c   :  { %677 = vmatprep.subr.bf16.mxu0 %v676_v40  ;;  %v212_v40 = vld [vmem:[#allocation2 + $0x2c8] sm:$0xff]  ;;  %v88_v46 = vld [vmem:[#allocation2 + $0x198] sm:$0xff]  ;;  %v738_v47 = vpack.c.bf16 %v209_v38, %v207_v37  ;;  %v211_v49 = vld [vmem:[#allocation2 + $0x2c0] sm:$0xff] }
  0x2d   :  { %v86_v45 = vld [vmem:[#allocation2 + $0x188] sm:$0xff]  ;;  %v740_v48 = vpack.c.bf16 %v214_v41, %v212_v40  ;;  %v213_v50 = vld [vmem:[#allocation2 + $0x2d0] sm:$0xff]  ;;  %v218_v53 = vld [vmem:[#allocation2 + $0x2f8] sm:$0xff] }
  0x2e   :  { %731 = vmatpush1.bf16.msra.mxu1 %v730_v23  ;;  %v216_v52 = vld [vmem:[#allocation2 + $0x2e8] sm:$0xff]  ;;  %v700_v54 = vpack.c.bf16 %v88_v46, %v86_v45  ;;  %v85_v55 = vld [vmem:[#allocation2 + $0x180] sm:$0xff]  ;;  %v87_v56 = vld [vmem:[#allocation2 + $0x190] sm:$0xff]  ;;  %v742_v59 = vpack.c.bf16 %v213_v50, %v211_v49 }
  0x2f   :  { %679 = vmatpush1.bf16.msra.mxu0 %v678_v51  ;;  %733 = vmatprep.subr.bf16.mxu1 %v732_v24  ;;  %v698_v51 = vpack.c.bf16 %v83_v44, %v81_v43  ;;  %v92_v58 = vld [vmem:[#allocation2 + $0x1b8] sm:$0xff]  ;;  %v744_v60 = vpack.c.bf16 %v218_v53, %v216_v52  ;;  %v215_v61 = vld [vmem:[#allocation2 + $0x2e0] sm:$0xff]  ;;  %v217_v62 = vld [vmem:[#allocation2 + $0x2f0] sm:$0xff]  ;;  %v702_v63 = vpack.c.bf16 %v87_v56, %v85_v55 }
  0x30   :  { %681 = vmatprep.subr.bf16.mxu0 %v680_v57  ;;  %v90_v57 = vld [vmem:[#allocation2 + $0x1a8] sm:$0xff]  ;;  %v222_v1 = vld [vmem:[#allocation2 + $0x318] sm:$0xff]  ;;  %v91_v4 = vld [vmem:[#allocation2 + $0x1b0] sm:$0xff]  ;;  %v746_v7 = vpack.c.bf16 %v217_v62, %v215_v61 }
  0x31   :  { %v220_v0 = vld [vmem:[#allocation2 + $0x308] sm:$0xff]  ;;  %v704_v2 = vpack.c.bf16 %v92_v58, %v90_v57  ;;  %v219_v9 = vld [vmem:[#allocation2 + $0x300] sm:$0xff]  ;;  %v221_v10 = vld [vmem:[#allocation2 + $0x310] sm:$0xff] }
  0x32   :  { %735 = vmatpush1.bf16.msra.mxu1 %v734_v35  ;;  %v94_v5 = vld [vmem:[#allocation2 + $0x1c8] sm:$0xff]  ;;  %v748_v8 = vpack.c.bf16 %v222_v1, %v220_v0  ;;  %v226_v13 = vld [vmem:[#allocation2 + $0x338] sm:$0xff]  ;;  %v95_v16 = vld [vmem:[#allocation2 + $0x1d0] sm:$0xff]  ;;  %v750_v19 = vpack.c.bf16 %v221_v10, %v219_v9 }
  0x33   :  { %683 = vmatpush1.bf16.msra.mxu0 %v682_v3  ;;  %737 = vmatprep.subr.bf16.mxu1 %v736_v36  ;;  %v89_v3 = vld [vmem:[#allocation2 + $0x1a0] sm:$0xff]  ;;  %v224_v12 = vld [vmem:[#allocation2 + $0x328] sm:$0xff]  ;;  %v225_v22 = vld [vmem:[#allocation2 + $0x330] sm:$0xff] }
  0x34   :  { %685 = vmatprep.subr.bf16.mxu0 %v684_v6  ;;  %v96_v6 = vld [vmem:[#allocation2 + $0x1d8] sm:$0xff]  ;;  %v706_v11 = vpack.c.bf16 %v91_v4, %v89_v3  ;;  %v98_v17 = vld [vmem:[#allocation2 + $0x1e8] sm:$0xff]  ;;  %v752_v20 = vpack.c.bf16 %v226_v13, %v224_v12  ;;  %v223_v21 = vld [vmem:[#allocation2 + $0x320] sm:$0xff] }
  0x35   :  { %v708_v14 = vpack.c.bf16 %v96_v6, %v94_v5  ;;  %v228_v24 = vld [vmem:[#allocation2 + $0x348] sm:$0xff]  ;;  %v230_v25 = vld [vmem:[#allocation2 + $0x358] sm:$0xff]  ;;  %v99_v28 = vld [vmem:[#allocation2 + $0x1f0] sm:$0xff]  ;;  %v754_v29 = vpack.c.bf16 %v225_v22, %v223_v21 }
  0x36   :  { %739 = vmatpush1.bf16.msra.mxu1 %v738_v47  ;;  %v227_v31 = vld [vmem:[#allocation2 + $0x340] sm:$0xff]  ;;  %v229_v32 = vld [vmem:[#allocation2 + $0x350] sm:$0xff]  ;;  %v232_v34 = vld [vmem:[#allocation2 + $0x368] sm:$0xff] }
  0x37   :  { %687 = vmatpush1.bf16.msra.mxu0 %v686_v15  ;;  %741 = vmatprep.subr.bf16.mxu1 %v740_v48  ;;  %v93_v15 = vld [vmem:[#allocation2 + $0x1c0] sm:$0xff]  ;;  %v234_v35 = vld [vmem:[#allocation2 + $0x378] sm:$0xff]  ;;  %v758_v36 = vpack.c.bf16 %v229_v32, %v227_v31  ;;  %v237_v46 = vld [vmem:[#allocation2 + $0x390] sm:$0xff] }
  0x38   :  { %689 = vmatprep.subr.bf16.mxu0 %v688_v18  ;;  %v100_v18 = vld [vmem:[#allocation2 + $0x1f8] sm:$0xff]  ;;  %v710_v23 = vpack.c.bf16 %v95_v16, %v93_v15  ;;  %v760_v37 = vpack.c.bf16 %v234_v35, %v232_v34  ;;  %v231_v38 = vld [vmem:[#allocation2 + $0x360] sm:$0xff]  ;;  %v240_v48 = vld [vmem:[#allocation2 + $0x3a8] sm:$0xff] }
  0x39   :  { %v712_v26 = vpack.c.bf16 %v100_v18, %v98_v17  ;;  %v35_v40 = vld [vmem:[%s1122_s0] sm:$0xff]  ;;  %v238_v43 = vld [vmem:[#allocation2 + $0x398] sm:$0xff]  ;;  %v241_v52 = vld [vmem:[#allocation2 + $0x3b0] sm:$0xff] }
  0x3a   :  { %743 = vmatpush1.bf16.msra.mxu1 %v742_v59  ;;  %v235_v45 = vld [vmem:[#allocation2 + $0x380] sm:$0xff]  ;;  %v242_v49 = vld [vmem:[#allocation2 + $0x3b8] sm:$0xff]  ;;  %v245_v58 = vld [vmem:[#allocation2 + $0x3d0] sm:$0xff] }
  0x3b   :  { %691 = vmatpush1.bf16.msra.mxu0 %v690_v27  ;;  %745 = vmatprep.subr.bf16.mxu1 %v744_v60  ;;  %v97_v27 = vld [vmem:[#allocation2 + $0x1e0] sm:$0xff]  ;;  %v766_v47 = vpack.c.bf16 %v237_v46, %v235_v45  ;;  %v768_v50 = vpack.c.bf16 %v242_v49, %v240_v48  ;;  %v246_v55 = vld [vmem:[#allocation2 + $0x3d8] sm:$0xff]  ;;  %v248_v59 = vld [vmem:[#allocation2 + $0x3e8] sm:$0xff] }
  0x3c   :  { %693 = vmatprep.subr.bf16.mxu0 %v692_v30  ;;  %v756_v30 = vpack.c.bf16 %v230_v25, %v228_v24  ;;  %v714_v33 = vpack.c.bf16 %v99_v28, %v97_v27  ;;  %v243_v56 = vld [vmem:[#allocation2 + $0x3c0] sm:$0xff]  ;;  %v250_v60 = vld [vmem:[#allocation2 + $0x3f8] sm:$0xff]  ;;  %v249_v0 = vld [vmem:[#allocation2 + $0x3f0] sm:$0xff] }
  0x3d   :  { %v774_v61 = vpack.c.bf16 %v245_v58, %v243_v56  ;;  %v776_v62 = vpack.c.bf16 %v250_v60, %v248_v59  ;;  %v341_v3 = vld [vmem:[#allocation2 + $0x418] sm:$0xff]  ;;  %v338_v4 = vld [vmem:[#allocation2 + $0x400] sm:$0xff]  ;;  %v340_v6 = vld [vmem:[#allocation2 + $0x410] sm:$0xff] }
  0x3e   :  { %747 = vmatpush1.bf16.msra.mxu1 %v746_v7  ;;  %v343_v7 = vld [vmem:[#allocation2 + $0x428] sm:$0xff]  ;;  %v782_v9 = vpack.c.bf16 %v340_v6, %v338_v4  ;;  %v344_v12 = vld [vmem:[#allocation2 + $0x430] sm:$0xff]  ;;  %v346_v17 = vld [vmem:[#allocation2 + $0x440] sm:$0xff] }
  0x3f   :  { %695 = vmatpush1.bf16.msra.mxu0 %v694_v39  ;;  %749 = vmatprep.subr.bf16.mxu1 %v748_v8  ;;  %v233_v39 = vld [vmem:[#allocation2 + $0x370] sm:$0xff]  ;;  %v345_v8 = vld [vmem:[#allocation2 + $0x438] sm:$0xff]  ;;  %v347_v13 = vld [vmem:[#allocation2 + $0x448] sm:$0xff] }
  0x40   :  { %697 = vmatprep.subr.bf16.mxu0 %v696_v42  ;;  %v762_v41 = vpack.c.bf16 %v233_v39, %v231_v38  ;;  %v236_v42 = vld [vmem:[#allocation2 + $0x388] sm:$0xff]  ;;  %v784_v10 = vpack.c.bf16 %v345_v8, %v343_v7  ;;  %v348_v18 = vld [vmem:[#allocation2 + $0x450] sm:$0xff]  ;;  %v361_v32 = vld [vmem:[#allocation2 + $0x4b8] sm:$0xff] }
  0x41   :  { %v764_v44 = vpack.c.bf16 %v238_v43, %v236_v42  ;;  %v790_v21 = vpack.c.bf16 %v348_v18, %v346_v17  ;;  %v352_v24 = vld [vmem:[#allocation2 + $0x470] sm:$0xff]  ;;  %v355_v25 = vld [vmem:[#allocation2 + $0x488] sm:$0xff]  ;;  %v358_v35 = vld [vmem:[#allocation2 + $0x4a0] sm:$0xff] }
  0x42   :  { %751 = vmatpush1.bf16.msra.mxu1 %v750_v19  ;;  %v351_v19 = vld [vmem:[#allocation2 + $0x468] sm:$0xff]  ;;  %v365_v38 = vld [vmem:[#allocation2 + $0x4d8] sm:$0xff]  ;;  %v364_v42 = vld [vmem:[#allocation2 + $0x4d0] sm:$0xff] }
  0x43   :  { %699 = vmatpush1.bf16.msra.mxu0 %v698_v51  ;;  %753 = vmatprep.subr.bf16.mxu1 %v752_v20  ;;  %v239_v51 = vld [vmem:[#allocation2 + $0x3a0] sm:$0xff]  ;;  %v353_v20 = vld [vmem:[#allocation2 + $0x478] sm:$0xff]  ;;  %v359_v31 = vld [vmem:[#allocation2 + $0x4a8] sm:$0xff] }
  0x44   :  { %701 = vmatprep.subr.bf16.mxu0 %v700_v54  ;;  %v770_v53 = vpack.c.bf16 %v241_v52, %v239_v51  ;;  %v244_v54 = vld [vmem:[#allocation2 + $0x3c8] sm:$0xff]  ;;  %v792_v22 = vpack.c.bf16 %v353_v20, %v351_v19  ;;  %v800_v34 = vpack.c.bf16 %v361_v32, %v359_v31  ;;  %v368_v48 = vld [vmem:[#allocation2 + $0x4f0] sm:$0xff]  ;;  %v377_v56 = vld [vmem:[#allocation2 + $0x538] sm:$0xff] }
  0x45   :  { %v772_v57 = vpack.c.bf16 %v246_v55, %v244_v54  ;;  %v367_v43 = vld [vmem:[#allocation2 + $0x4e8] sm:$0xff]  ;;  %v372_v54 = vld [vmem:[#allocation2 + $0x510] sm:$0xff]  ;;  %v374_v59 = vld [vmem:[#allocation2 + $0x520] sm:$0xff] }
  0x46   :  { %755 = vmatpush1.bf16.msra.mxu1 %v754_v29  ;;  %v354_v29 = vld [vmem:[#allocation2 + $0x480] sm:$0xff]  ;;  %v371_v49 = vld [vmem:[#allocation2 + $0x508] sm:$0xff]  ;;  %v376_v60 = vld [vmem:[#allocation2 + $0x530] sm:$0xff] }
  0x47   :  { %703 = vmatpush1.bf16.msra.mxu0 %v702_v63  ;;  %757 = vmatprep.subr.bf16.mxu1 %v756_v30  ;;  %v247_v63 = vld [vmem:[#allocation2 + $0x3e0] sm:$0xff]  ;;  %v356_v30 = vld [vmem:[#allocation2 + $0x490] sm:$0xff]  ;;  %v375_v55 = vld [vmem:[#allocation2 + $0x528] sm:$0xff] }
  0x48   :  { %705 = vmatprep.subr.bf16.mxu0 %v704_v2  ;;  %v778_v1 = vpack.c.bf16 %v249_v0, %v247_v63  ;;  %v339_v2 = vld [vmem:[#allocation2 + $0x408] sm:$0xff]  ;;  %v816_v58 = vpack.c.bf16 %v377_v56, %v375_v55  ;;  %v818_v63 = vpack.c.bf16 %v376_v60, %v374_v59  ;;  %v385_v4 = vld [vmem:[#allocation2 + $0x578] sm:$0xff]  ;;  %v382_v7 = vld [vmem:[#allocation2 + $0x560] sm:$0xff] }
  0x49   :  { %v780_v5 = vpack.c.bf16 %v341_v3, %v339_v2  ;;  %v380_v2 = vld [vmem:[#allocation2 + $0x550] sm:$0xff]  ;;  %v383_v3 = vld [vmem:[#allocation2 + $0x568] sm:$0xff]  ;;  %v390_v32 = vld [vmem:[#allocation2 + $0x5a0] sm:$0xff] }
  0x4a   :  { %759 = vmatpush1.bf16.msra.mxu1 %v758_v36  ;;  %v360_v36 = vld [vmem:[#allocation2 + $0x4b0] sm:$0xff]  ;;  %v824_v6 = vpack.c.bf16 %v385_v4, %v383_v3  ;;  %v509_v59 = vld [vmem:[%s1125_s3 + $0xa8] sm:$0xff] }
  0x4b   :  { %707 = vmatpush1.bf16.msra.mxu0 %v706_v11  ;;  %761 = vmatprep.subr.bf16.mxu1 %v760_v37  ;;  %v342_v11 = vld [vmem:[#allocation2 + $0x420] sm:$0xff]  ;;  %v363_v37 = vld [vmem:[#allocation2 + $0x4c8] sm:$0xff]  ;;  %v802_v39 = vpack.c.bf16 %v360_v36, %v358_v35  ;;  %v384_v8 = vld [vmem:[#allocation2 + $0x570] sm:$0xff] }
  0x4c   :  { %709 = vmatprep.subr.bf16.mxu0 %v708_v14  ;;  %v349_v14 = vld [vmem:[#allocation2 + $0x458] sm:$0xff]  ;;  %v786_v15 = vpack.c.bf16 %v344_v12, %v342_v11  ;;  %v395_v35 = vld [vmem:[#allocation2 + $0x5c8] sm:$0xff]  ;;  %v490_v56 = vld [vmem:[%s1125_s3 + $0x10] sm:$0xff] }
  0x4d   :  { %v788_v16 = vpack.c.bf16 %v349_v14, %v347_v13  ;;  %v101_v13 = vld [vmem:[%s1124_s2] ss:$4 sm:$0x3]  ;;  %v397_v36 = vld [vmem:[#allocation2 + $0x5d8] sm:$0xff]  ;;  %v494_v4 = vld [vmem:[%s1125_s3 + $0x30] sm:$0xff] }
  0x4e   :  { %763 = vmatpush1.bf16.msra.mxu1 %v762_v41  ;;  %v362_v41 = vld [vmem:[#allocation2 + $0x4c0] sm:$0xff] }
  0x4f   :  { %711 = vmatpush1.bf16.msra.mxu0 %v710_v23  ;;  %765 = vmatprep.subr.bf16.mxu1 %v764_v44  ;;  %v350_v23 = vld [vmem:[#allocation2 + $0x460] sm:$0xff]  ;;  %v369_v44 = vld [vmem:[#allocation2 + $0x4f8] sm:$0xff]  ;;  %v806_v45 = vpack.c.bf16 %v364_v42, %v362_v41 }
  0x50   :  { %713 = vmatprep.subr.bf16.mxu0 %v712_v26  ;;  %v357_v26 = vld [vmem:[#allocation2 + $0x498] sm:$0xff]  ;;  %v794_v27 = vpack.c.bf16 %v352_v24, %v350_v23  ;;  %v808_v46 = vpack.c.bf16 %v369_v44, %v367_v43  ;;  %v387_v23 = vld [vmem:[#allocation2 + $0x588] sm:$0xff]  ;;  %v398_v44 = vld [vmem:[#allocation2 + $0x5e0] sm:$0xff] }
  0x51   :  { %v796_v28 = vpack.c.bf16 %v357_v26, %v355_v25  ;;  %v389_v24 = vld [vmem:[#allocation2 + $0x598] sm:$0xff]  ;;  %v386_v26 = vld [vmem:[#allocation2 + $0x580] sm:$0xff] }
  0x52   :  { %767 = vmatpush1.bf16.msra.mxu1 %v766_v47  ;;  %v366_v47 = vld [vmem:[#allocation2 + $0x4e0] sm:$0xff]  ;;  %v828_v25 = vpack.c.bf16 %v389_v24, %v387_v23  ;;  %v401_v41 = vld [vmem:[#allocation2 + $0x5f8] sm:$0xff]  ;;  %v514_v24 = vld [vmem:[%s1125_s3 + $0xd0] sm:$0xff] }
  0x53   :  { %715 = vmatpush1.bf16.msra.mxu0 %v714_v33  ;;  %769 = vmatprep.subr.bf16.mxu1 %v768_v50  ;;  %v798_v33 = vpack.c.bf16 %v356_v30, %v354_v29  ;;  %v373_v50 = vld [vmem:[#allocation2 + $0x518] sm:$0xff]  ;;  %v810_v51 = vpack.c.bf16 %v368_v48, %v366_v47  ;;  %v391_v29 = vld [vmem:[#allocation2 + $0x5a8] sm:$0xff]  ;;  %v504_v47 = vld [vmem:[%s1125_s3 + $0x80] sm:$0xff] }
  0x54   :  { %781 = vmatprep.subr.bf16.mxu0 %v780_v5  ;;  %v812_v52 = vpack.c.bf16 %v373_v50, %v371_v49  ;;  %v393_v30 = vld [vmem:[#allocation2 + $0x5b8] sm:$0xff]  ;;  %v505_v48 = vld [vmem:[%s1125_s3 + $0x88] sm:$0xff]  ;;  %v488_v49 = vld [vmem:[%s1125_s3] sm:$0xff] }
  0x55   :  { %v832_v31 = vpack.c.bf16 %v393_v30, %v391_v29  ;;  %v844_v50 = vpack.c.bf16 %v505_v48, %v504_v47  ;;  %v516_v30 = vld [vmem:[%s1125_s3 + $0xe0] sm:$0xff] }
  0x56   :  { %178 = vmatmul.mubr.f32.vlgmr.msra.gmra.mrb[0].mxu0 %v35_v40  ;;  %771 = vmatpush1.bf16.msra.mxu1 %v770_v53  ;;  %v804_v40 = vpack.c.bf16 %v365_v38, %v363_v37  ;;  %v370_v53 = vld [vmem:[#allocation2 + $0x500] sm:$0xff]  ;;  %v836_v38 = vpack.c.bf16 %v397_v36, %v395_v35  ;;  %v518_v35 = vld [vmem:[%s1125_s3 + $0xf0] sm:$0xff]  ;;  %v519_v36 = vld [vmem:[%s1125_s3 + $0xf8] sm:$0xff] }
  0x57   :  { %773 = vmatprep.subr.bf16.mxu1 %v772_v57  ;;  %783 = vmatpush1.bf16.msra.mxu0 %v782_v9  ;;  %v814_v57 = vpack.c.bf16 %v372_v54, %v370_v53  ;;  %v826_v9 = vpack.c.bf16 %v384_v8, %v382_v7  ;;  %v394_v37 = vld [vmem:[#allocation2 + $0x5c0] sm:$0xff]  ;;  %v507_v53 = vld [vmem:[%s1125_s3 + $0x98] sm:$0xff] }
  0x58   :  { %785 = vmatprep.subr.bf16.mxu0 %v784_v10  ;;  %v103_v10 = vlaneseq  ;;  %v614_v7 = vld [vmem:[%s1124_s2 + $0x1] ss:$4 sm:$0x3] }
  0x5a   :  { %775 = vmatpush1.bf16.msra.mxu1 %v774_v61  ;;  %v379_v61 = vld [vmem:[#allocation2 + $0x548] sm:$0xff]  ;;  %v104_v11 = vshrl.u32 %v103_v10, 7 }
  0x5b   :  { %777 = vmatprep.subr.bf16.mxu1 %v776_v62  ;;  %787 = vmatpush1.bf16.msra.mxu0 %v786_v15  ;;  %v381_v62 = vld [vmem:[#allocation2 + $0x558] sm:$0xff] }
  0x5c   :  { %789 = vmatprep.subr.bf16.mxu0 %v788_v16  ;;  %v820_v0 = vpack.c.bf16 %v381_v62, %v379_v61  ;;  %v992_v12 = vsub.s32 0, %v104_v11  ;;  %v997_v14 = vsub.s32 1, %v104_v11  ;;  %v492_v62 = vld [vmem:[%s1125_s3 + $0x20] sm:$0xff] }
  0x5e   :  { %779 = vmatpush1.bf16.msra.mxu1 %v778_v1  ;;  %v378_v1 = vld [vmem:[#allocation2 + $0x540] sm:$0xff]  ;;  %v106_v15 = vrot.slane %v101_v13, %v992_v12  ;;  %v110_v16 = vrot.slane %v101_v13, %v997_v14  ;;  %v257_v8 = vrot.slane %v614_v7, %v992_v12 }
  0x5f   :  { %791 = vmatpush1.bf16.msra.mxu0 %v790_v21  ;;  %v822_v5 = vpack.c.bf16 %v380_v2, %v378_v1  ;;  %845 = vmatprep.subr.bf16.mxu1 %v844_v50  ;;  %v511_v1 = vld [vmem:[%s1125_s3 + $0xb8] sm:$0xff] }
  0x60   :  { %793 = vmatprep.subr.bf16.mxu0 %v792_v22 }
  0x63   :  { %795 = vmatpush1.bf16.msra.mxu0 %v794_v27  ;;  %v388_v27 = vld [vmem:[#allocation2 + $0x590] sm:$0xff] }
  0x64   :  { %797 = vmatprep.subr.bf16.mxu0 %v796_v28  ;;  %v830_v28 = vpack.c.bf16 %v388_v27, %v386_v26  ;;  %v498_v27 = vld [vmem:[%s1125_s3 + $0x50] sm:$0xff] }
  0x67   :  { %799 = vmatpush1.bf16.msra.mxu0 %v798_v33  ;;  %v392_v33 = vld [vmem:[#allocation2 + $0x5b0] sm:$0xff] }
  0x68   :  { %801 = vmatprep.subr.bf16.mxu0 %v800_v34  ;;  %v834_v34 = vpack.c.bf16 %v392_v33, %v390_v32  ;;  %v500_v32 = vld [vmem:[%s1125_s3 + $0x60] sm:$0xff] }
  0x6b   :  { %803 = vmatpush1.bf16.msra.mxu0 %v802_v39  ;;  %v396_v39 = vld [vmem:[#allocation2 + $0x5d0] sm:$0xff] }
  0x6c   :  { %805 = vmatprep.subr.bf16.mxu0 %v804_v40  ;;  %v399_v40 = vld [vmem:[#allocation2 + $0x5e8] sm:$0xff]  ;;  %v838_v42 = vpack.c.bf16 %v396_v39, %v394_v37  ;;  %v502_v39 = vld [vmem:[%s1125_s3 + $0x70] sm:$0xff] }
  0x6d   :  { %v840_v43 = vpack.c.bf16 %v401_v41, %v399_v40  ;;  %v503_v40 = vld [vmem:[%s1125_s3 + $0x78] sm:$0xff] }
  0x6e   :  { %v874_v41 = vpack.c.bf16 %v503_v40, %v502_v39 }
  0x6f   :  { %807 = vmatpush1.bf16.msra.mxu0 %v806_v45  ;;  %v400_v45 = vld [vmem:[#allocation2 + $0x5f0] sm:$0xff] }
  0x70   :  { %809 = vmatprep.subr.bf16.mxu0 %v808_v46  ;;  %v842_v46 = vpack.c.bf16 %v400_v45, %v398_v44 }
  0x73   :  { %811 = vmatpush1.bf16.msra.mxu0 %v810_v51  ;;  %v489_v51 = vld [vmem:[%s1125_s3 + $0x8] sm:$0xff] }
  0x74   :  { %813 = vmatprep.subr.bf16.mxu0 %v812_v52  ;;  %v506_v52 = vld [vmem:[%s1125_s3 + $0x90] sm:$0xff]  ;;  %v846_v54 = vpack.c.bf16 %v489_v51, %v488_v49 }
  0x75   :  { %v848_v55 = vpack.c.bf16 %v507_v53, %v506_v52  ;;  %v616_v52 = vld [vmem:[%s1126_s4] ss:$0 sm:$0xff] }
  0x77   :  { %815 = vmatpush1.bf16.msra.mxu0 %v814_v57  ;;  %v491_v57 = vld [vmem:[%s1125_s3 + $0x18] sm:$0xff] }
  0x78   :  { %817 = vmatprep.subr.bf16.mxu0 %v816_v58  ;;  %v508_v58 = vld [vmem:[%s1125_s3 + $0xa0] sm:$0xff]  ;;  %v850_v60 = vpack.c.bf16 %v491_v57, %v490_v56 }
  0x79   :  { %v852_v61 = vpack.c.bf16 %v509_v59, %v508_v58 }
  0x7b   :  { %819 = vmatpush1.bf16.msra.mxu0 %v818_v63  ;;  %v493_v63 = vld [vmem:[%s1125_s3 + $0x28] sm:$0xff] }
  0x7c   :  { %821 = vmatprep.subr.bf16.mxu0 %v820_v0  ;;  %v510_v0 = vld [vmem:[%s1125_s3 + $0xb0] sm:$0xff]  ;;  %v854_v2 = vpack.c.bf16 %v493_v63, %v492_v62 }
  0x7d   :  { %v856_v3 = vpack.c.bf16 %v511_v1, %v510_v0 }
  0x7f   :  { %823 = vmatpush1.bf16.msra.mxu0 %v822_v5  ;;  %v495_v5 = vld [vmem:[%s1125_s3 + $0x38] sm:$0xff] }
  0x80   :  { %825 = vmatprep.subr.bf16.mxu0 %v824_v6  ;;  %v858_v6 = vpack.c.bf16 %v495_v5, %v494_v4 }
  0x83   :  { %827 = vmatpush1.bf16.msra.mxu0 %v826_v9  ;;  %v261_v9 = vrot.slane %v614_v7, %v997_v14 }
  0x84   :  { %829 = vmatprep.subr.bf16.mxu0 %v828_v25  ;;  %v515_v25 = vld [vmem:[%s1125_s3 + $0xd8] sm:$0xff] }
  0x85   :  { %v864_v26 = vpack.c.bf16 %v515_v25, %v514_v24 }
  0x87   :  { %831 = vmatpush1.bf16.msra.mxu0 %v830_v28  ;;  %v499_v28 = vld [vmem:[%s1125_s3 + $0x58] sm:$0xff] }
  0x88   :  { %833 = vmatprep.subr.bf16.mxu0 %v832_v31  ;;  %v866_v29 = vpack.c.bf16 %v499_v28, %v498_v27  ;;  %v517_v31 = vld [vmem:[%s1125_s3 + $0xe8] sm:$0xff] }
  0x89   :  { %v868_v33 = vpack.c.bf16 %v517_v31, %v516_v30 }
  0x8b   :  { %835 = vmatpush1.bf16.msra.mxu0 %v834_v34  ;;  %v501_v34 = vld [vmem:[%s1125_s3 + $0x68] sm:$0xff] }
  0x8c   :  { %837 = vmatprep.subr.bf16.mxu0 %v836_v38  ;;  %v870_v37 = vpack.c.bf16 %v501_v34, %v500_v32  ;;  %v872_v38 = vpack.c.bf16 %v519_v36, %v518_v35 }
  0x8f   :  { %839 = vmatpush1.bf16.msra.mxu0 %v838_v42  ;;  %v615_v42 = vld [vmem:[%s1124_s2 + $0x2] ss:$4 sm:$0x3]  ;;  %s943_s2 = smov [#allocation5]  }
  0x90   :  { %841 = vmatprep.subr.bf16.mxu0 %v840_v43  ;;  %v408_v43 = vrot.slane %v615_v42, %v992_v12  ;;  %v412_v44 = vrot.slane %v615_v42, %v997_v14  ;;  %s605_s26 = sshll.u32 %s943_s2, 4  ;;  %s606_s26 = int_to_ptr.vmem [resolvable:$true] %s605_s26 }
  0x91   :  { %s914_s27 = scalar_lea.vmem %s606_s26, 128  ;;  %p919_p9 = scmp.lt.s32.totalorder %s606_s26, %s606_s26 }
  0x92   :  { %p915_p8 = scmp.ne.s32.totalorder %s606_s26, %s914_s27  ;;  %p920_p10 = scmp.lt.s32.totalorder %s914_s27, %s914_s27 }
  0x93   :  { %843 = vmatpush1.bf16.msra.mxu0 %v842_v46 }
  0x94   :  { %p921_p11 = por %p920_p10, %p919_p9 }
  0x96   :  { %p922_p12 = pnand %p921_p11, %p915_p8 }
 0x129   :  { %v179_v17 = vpop.f32.mrb[0].mxu0 }
 0x12a   :  { %v180_v18 = vadd.f32 %v179_v17, %v106_v15  ;;  %v181_v19 = vpop.f32.mrb[1].mxu0 }
 0x12b   :  { %v182_v20 = vadd.f32 %v181_v19, %v110_v16  ;;  %v513_v19 = vld [vmem:[%s1125_s3 + $0xc8] sm:$0xff] }
 0x12d   :  { %880 = vtanh.f32 %v182_v20 }
 0x12e   :  { %882 = vtanh.f32 %v180_v18  ;;  %v512_v18 = vld [vmem:[%s1125_s3 + $0xc0] sm:$0xff] }
 0x12f   :  { %v860_v20 = vpack.c.bf16 %v513_v19, %v512_v18 }
 0x137   :  { %v881_v21 = vpop.eup %880 }
 0x138   :  { %v883_v22 = vpop.eup %882  ;;  %328 = vmatprep.mubr.f32.mxu1 %v881_v21  ;;  %v496_v21 = vld [vmem:[%s1125_s3 + $0x40] sm:$0xff] }
 0x139   :  { %329 = vmatmul.mubr.f32.vlgmr.msra.gmra.mrb[0].mxu1 %v883_v22  ;;  %v497_v22 = vld [vmem:[%s1125_s3 + $0x48] sm:$0xff] }
 0x13a   :  { %847 = vmatpush3.bf16.msra.mxu1 %v846_v54  ;;  %v862_v23 = vpack.c.bf16 %v497_v22, %v496_v21 }
 0x13b   :  { %849 = vmatprep.subr.bf16.mxu1 %v848_v55 }
 0x13e   :  { %851 = vmatpush3.bf16.msra.mxu1 %v850_v60 }
 0x13f   :  { %853 = vmatprep.subr.bf16.mxu1 %v852_v61 }
 0x142   :  { %855 = vmatpush3.bf16.msra.mxu1 %v854_v2 }
 0x143   :  { %857 = vmatprep.subr.bf16.mxu1 %v856_v3 }
 0x146   :  { %859 = vmatpush3.bf16.msra.mxu1 %v858_v6 }
 0x147   :  { %861 = vmatprep.subr.bf16.mxu1 %v860_v20 }
 0x14a   :  { %863 = vmatpush3.bf16.msra.mxu1 %v862_v23 }
 0x14b   :  { %865 = vmatprep.subr.bf16.mxu1 %v864_v26 }
 0x14e   :  { %867 = vmatpush3.bf16.msra.mxu1 %v866_v29 }
 0x14f   :  { %869 = vmatprep.subr.bf16.mxu1 %v868_v33 }
 0x152   :  { %871 = vmatpush3.bf16.msra.mxu1 %v870_v37 }
 0x153   :  { %873 = vmatprep.subr.bf16.mxu1 %v872_v38 }
 0x156   :  { %875 = vmatpush3.bf16.msra.mxu1 %v874_v41 }
 0x20c   :  { %v330_v10 = vpop.f32.mrb[0].mxu1 }
 0x20d   :  { %v331_v11 = vadd.f32 %v330_v10, %v257_v8  ;;  %v332_v13 = vpop.f32.mrb[1].mxu1 }
 0x20e   :  { %v333_v15 = vadd.f32 %v332_v13, %v261_v9 }
 0x210   :  { %884 = vtanh.f32 %v333_v15 }
 0x211   :  { %886 = vtanh.f32 %v331_v11 }
 0x21a   :  { %v885_v16 = vpop.eup %884 }
 0x21b   :  { %v887_v17 = vpop.eup %886  ;;  %479 = vmatprep.mubr.f32.mxu0 %v885_v16 }
 0x21c   :  { %480 = vmatmul.mubr.f32.vlgmr.msra.gmra.mrb[2].mxu0 %v887_v17 }
 0x2ef   :  { %v481_v45 = vpop.f32.mrb[2].mxu0 }
 0x2f0   :  { %v482_v46 = vadd.f32 %v481_v45, %v408_v43  ;;  %v483_v47 = vpop.f32.mrb[3].mxu0 }
 0x2f1   :  { %v484_v48 = vadd.f32 %v483_v47, %v412_v44 }
 0x2f3   :  { %888 = vtanh.f32 %v484_v48 }
 0x2f4   :  { %890 = vtanh.f32 %v482_v46 }
 0x2fd   :  { %v889_v49 = vpop.eup %888 }
 0x2fe   :  { %v891_v50 = vpop.eup %890  ;;  %591 = vmatprep.mubr.f32.mxu1 %v889_v49 }
 0x2ff   :  { %592 = vmatmul.mubr.f32.vlgmr.msra.gmra.mrb[2].mxu1 %v891_v50 }
 0x3d2   :  { %v649_v51 = vpop.f32.mrb[2].mxu1 }
 0x3d3   :  { %v650_v53 = vpop.f32.mrb[3].mxu1 }
 0x3d4   :  { %v651_v12 = vadd.f32 %v650_v53, %v649_v51 }
 0x3d6   :  { %v594_v14 = vadd.f32 %v651_v12, %v616_v52 }
 0x3d8   :  { %598 = vst.msk [vmem:[#allocation5] sm:$0xff] %vm597_vm0, %v594_v14 }
 0x3d9   :  { %925 = shalt.err (!%p922_p12)
}
 0x3da   :  { %s926_s30 = scalar_lea.hbm %s1127_s5, 128 }
 0x3db   :  { %p927_p13 = scmp.ne.s32.totalorder %s1127_s5, %s926_s30  ;;  %p930_p0 = scmp.lt.u32.totalorder %s926_s30, %s1127_s5 }
 0x3dd   :  { %p932_p1 = pnand %p930_p0, %p927_p13 }
 0x3df   :  { %935 = shalt.err (!%p932_p1)
}
 0x3e0   :  { %608 = dma.vmem_to_hbm [thread:$0]  %s606_s26, 128, %s1127_s5, [#allocation4]  }
 0x3e1   :  { %938 = dma.done.wait [#allocation4], 128  }
 0x3e2   :  { %939 = vsyncadd [#allocation4], 4294967168 }
 0x3e3   :  { %612 = vsyncpa [#allocation3], 1 }
 0x3e4   :  { %613 = vsyncpa [#allocation4], 1 }

</bundles_post_ra>
